<compile_context>
chip_gen: v7x
topology: tpu7x:2x2x1
jax: 0.10.0
libtpu: 0.0.40
codegen_flags: <defaults>
</compile_context>

<pallas_src>
import jax
import jax.numpy as jnp
from jax.experimental import pallas as pl
from jax.experimental.pallas import tpu as pltpu


def _round_up(n, m):
    return ((n + m - 1) // m) * m


def dqn_kernel(x_ref, w1_ref, b1_ref, w2_ref, b2_ref, o_ref):
    # hidden = relu(x @ W1 + b1); W1 pre-transposed to (in, Hp), Hp mult-of-8.
    x = x_ref[...]
    h = jnp.dot(x.astype(w1_ref.dtype), w1_ref[...],
                preferred_element_type=jnp.float32)
    h = jnp.maximum(h + b1_ref[...], 0.0)            # f32 bias + ReLU on the VPU
    # q = hidden @ W2 + b2; W2 pre-transposed to (Hp, out_actions), N unpadded.
    q = jnp.dot(h.astype(w2_ref.dtype), w2_ref[...],
                preferred_element_type=jnp.float32)
    o_ref[...] = (q + b2_ref[...]).astype(o_ref.dtype)


def prepare_dqn_params(w1, b1, w2, b2, *, compute_dtype=jnp.bfloat16):
    """One-time parameter prep (hoisted out of the forward path).

    Takes torch.nn.Linear-layout weights: w1 (h1, in), b1 (h1,), w2 (out, h1),
    b2 (out,).  Returns transposed weights; hidden dim padded only to a
    multiple of 8 sublanes, output dim left unpadded (lane-masked but tiny).
    Zero padding is exact through ReLU and the second matmul.
    """
    h1, in_states = w1.shape
    out_actions, _ = w2.shape
    hp = _round_up(h1, 8)

    w1t = jnp.zeros((in_states, hp), compute_dtype).at[:, :h1].set(
        jnp.transpose(w1).astype(compute_dtype))
    w2t = jnp.zeros((hp, out_actions), compute_dtype).at[:h1, :].set(
        jnp.transpose(w2).astype(compute_dtype))
    # Padded hidden bias entries must stay zero so ReLU / matmul padding is exact.
    b1p = jnp.zeros((1, hp), jnp.float32).at[:, :h1].set(b1.astype(jnp.float32))
    b2p = b2.astype(jnp.float32).reshape(1, out_actions)
    return dict(w1t=w1t, b1p=b1p, w2t=w2t, b2p=b2p)


_TB_MAX = 4096  # rows per batch tile; ~15 MiB total VMEM at this size (safe on all gens)


def dqn_forward(x, params):
    """x: (B, in_states) f32; params from prepare_dqn_params. Returns (B, out_actions) f32."""
    w1t, b1p, w2t, b2p = params["w1t"], params["b1p"], params["w2t"], params["b2p"]
    B, in_states = x.shape
    hp = w1t.shape[1]
    out_actions = w2t.shape[1]

    # Batch tiling: largest tile that fits comfortably in VMEM, but split into
    # >=2 grid steps when possible so the "parallel" batch axis shards across
    # v7x's two TensorCores.  tb is a multiple of 8 (sublane rule); the last
    # block may be partial (OOB rows are don't-care, OOB writes are dropped).
    tb = min(_TB_MAX, max(8, _round_up(pl.cdiv(B, 2), 8)))
    grid = (pl.cdiv(B, tb),)

    # Honest cost estimate (unpadded output, weights counted once).
    flops = 2 * B * in_states * hp + 2 * B * hp * out_actions
    bytes_accessed = (B * in_states * x.dtype.itemsize
                      + w1t.size * w1t.dtype.itemsize
                      + w2t.size * w2t.dtype.itemsize
                      + b1p.size * 4 + b2p.size * 4
                      + B * out_actions * 4)

    return pl.pallas_call(
        dqn_kernel,
        out_shape=jax.ShapeDtypeStruct((B, out_actions), jnp.float32),
        grid=grid,
        in_specs=[
            pl.BlockSpec((tb, in_states), lambda i: (i, 0)),
            pl.BlockSpec((in_states, hp), lambda i: (0, 0)),   # resident weights
            pl.BlockSpec((1, hp), lambda i: (0, 0)),
            pl.BlockSpec((hp, out_actions), lambda i: (0, 0)),
            pl.BlockSpec((1, out_actions), lambda i: (0, 0)),
        ],
        out_specs=pl.BlockSpec((tb, out_actions), lambda i: (i, 0)),
        compiler_params=pltpu.CompilerParams(
            dimension_semantics=("parallel",),
            vmem_limit_bytes=32 * 1024 * 1024),
        cost_estimate=pl.CostEstimate(
            flops=flops, transcendentals=0, bytes_accessed=bytes_accessed),
    )(x, w1t, b1p, w2t, b2p)


def dqn_reference(x, w1, b1, w2, b2):
    h = jnp.maximum(x @ w1.T + b1, 0.0)
    return h @ w2.T + b2


if __name__ == "__main__":
    # Module-implied shapes: in_states=16, h1_nodes=32, out_actions=4.
    # B=128 ~ a typical DQN replay-buffer minibatch.
    B, in_states, h1_nodes, out_actions = 128, 16, 32, 4

    key = jax.random.PRNGKey(0)
    kx, kw1, kb1, kw2, kb2 = jax.random.split(key, 5)

    x = jax.random.normal(kx, (B, in_states), dtype=jnp.float32)
    # Deterministic synthetic parameters (nn.Linear shapes: (out, in) and (out,)).
    w1 = jax.random.normal(kw1, (h1_nodes, in_states), dtype=jnp.float32) * 0.1
    b1 = jax.random.normal(kb1, (h1_nodes,), dtype=jnp.float32) * 0.1
    w2 = jax.random.normal(kw2, (out_actions, h1_nodes), dtype=jnp.float32) * 0.1
    b2 = jax.random.normal(kb2, (out_actions,), dtype=jnp.float32) * 0.1

    ref = dqn_reference(x, w1, b1, w2, b2)

    # f32-weight path.  Tolerance covers possible default-precision bf16 MXU
    # passes on either the kernel or the XLA reference side.
    params_f32 = prepare_dqn_params(w1, b1, w2, b2, compute_dtype=jnp.float32)
    out_f32 = dqn_forward(x, params_f32)
    jax.block_until_ready(out_f32)
    assert out_f32.shape == (B, out_actions)
    assert jnp.allclose(out_f32, ref, atol=5e-3, rtol=5e-3)

    # Default bf16-weight path (v6e/v7x MXU native; f32 accumulate, f32 bias/ReLU).
    params_bf16 = prepare_dqn_params(w1, b1, w2, b2)
    out_bf16 = dqn_forward(x, params_bf16)
    jax.block_until_ready(out_bf16)
    assert out_bf16.shape == (B, out_actions)
    assert jnp.allclose(out_bf16, ref, atol=3e-2, rtol=3e-2)

    # Ragged tiny batch: single partial block, no wrapper-side padding.
    out_small = dqn_forward(x[:5], params_f32)
    jax.block_until_ready(out_small)
    assert out_small.shape == (5, out_actions)
    assert jnp.allclose(out_small, ref[:5], atol=5e-3, rtol=5e-3)

    # Larger ragged batch: multi-step grid (megacore path) + partial last tile.
    B2 = 1030
    x2 = jax.random.normal(jax.random.PRNGKey(1), (B2, in_states), dtype=jnp.float32)
    ref2 = dqn_reference(x2, w1, b1, w2, b2)
    out2 = dqn_forward(x2, params_f32)
    jax.block_until_ready(out2)
    assert out2.shape == (B2, out_actions)
    assert jnp.allclose(out2, ref2, atol=5e-3, rtol=5e-3)

    print("KERNEL_OK")
</pallas_src>

<mosaic_0001>
module attributes {stable_mosaic.version = 11 : i64} {
  func.func @dqn_kernel(%arg0: i32, %arg1: memref<64x16xf32, #tpu.memory_space<vmem>>, %arg2: memref<16x32xf32, #tpu.memory_space<vmem>>, %arg3: memref<1x32xf32, #tpu.memory_space<vmem>>, %arg4: memref<32x4xf32, #tpu.memory_space<vmem>>, %arg5: memref<1x4xf32, #tpu.memory_space<vmem>>, %arg6: memref<64x4xf32, #tpu.memory_space<vmem>>) attributes {dimension_semantics = [#tpu.dimension_semantics<parallel>], iteration_bounds = array<i64: 2>, scalar_prefetch = 0 : i64, scratch_operands = 0 : i64, tpu.core_type = #tpu.core_type<tc>, window_params = [{transform_indices = @transform_0, window_bounds = array<i64: 64, 16>}, {pipeline_mode = #tpu.pipeline_mode<synchronous>, transform_indices = @transform_1, window_bounds = array<i64: 16, 32>}, {pipeline_mode = #tpu.pipeline_mode<synchronous>, transform_indices = @transform_2, window_bounds = array<i64: 1, 32>}, {pipeline_mode = #tpu.pipeline_mode<synchronous>, transform_indices = @transform_3, window_bounds = array<i64: 32, 4>}, {pipeline_mode = #tpu.pipeline_mode<synchronous>, transform_indices = @transform_4, window_bounds = array<i64: 1, 4>}, {transform_indices = @transform_5, window_bounds = array<i64: 64, 4>}]} {
    %c0 = arith.constant 0 : index
    %c0_0 = arith.constant 0 : index
    %0 = vector.load %arg1[%c0, %c0_0] : memref<64x16xf32, #tpu.memory_space<vmem>>, vector<64x16xf32>
    %c0_1 = arith.constant 0 : index
    %c0_2 = arith.constant 0 : index
    %1 = vector.load %arg2[%c0_1, %c0_2] : memref<16x32xf32, #tpu.memory_space<vmem>>, vector<16x32xf32>
    %cst = arith.constant dense<0.000000e+00> : vector<64x32xf32>
    %2 = tpu.matmul %0, %1, %cst {dimension_numbers = #tpu.dot_dimension_numbers<[1], [0], [0], [1], [0, 0, 1, 1], [], []>} : vector<64x16xf32>, vector<16x32xf32>, vector<64x32xf32> -> vector<64x32xf32>
    %c0_3 = arith.constant 0 : index
    %c0_4 = arith.constant 0 : index
    %3 = vector.load %arg3[%c0_3, %c0_4] : memref<1x32xf32, #tpu.memory_space<vmem>>, vector<1x32xf32>
    %4 = vector.broadcast %3 : vector<1x32xf32> to vector<64x32xf32>
    %5 = arith.addf %2, %4 : vector<64x32xf32>
    %cst_5 = arith.constant 0.000000e+00 : f32
    %6 = vector.broadcast %cst_5 : f32 to vector<64x32xf32>
    %7 = arith.maximumf %5, %6 : vector<64x32xf32>
    %c0_6 = arith.constant 0 : index
    %c0_7 = arith.constant 0 : index
    %8 = vector.load %arg4[%c0_6, %c0_7] : memref<32x4xf32, #tpu.memory_space<vmem>>, vector<32x4xf32>
    %cst_8 = arith.constant dense<0.000000e+00> : vector<64x4xf32>
    %9 = tpu.matmul %7, %8, %cst_8 {dimension_numbers = #tpu.dot_dimension_numbers<[1], [0], [0], [1], [0, 0, 1, 1], [], []>} : vector<64x32xf32>, vector<32x4xf32>, vector<64x4xf32> -> vector<64x4xf32>
    %c0_9 = arith.constant 0 : index
    %c0_10 = arith.constant 0 : index
    %10 = vector.load %arg5[%c0_9, %c0_10] : memref<1x4xf32, #tpu.memory_space<vmem>>, vector<1x4xf32>
    %11 = vector.broadcast %10 : vector<1x4xf32> to vector<64x4xf32>
    %12 = arith.addf %9, %11 : vector<64x4xf32>
    %c0_11 = arith.constant 0 : index
    %c0_12 = arith.constant 0 : index
    %13 = vector.load %arg6[%c0_11, %c0_12] : memref<64x4xf32, #tpu.memory_space<vmem>>, vector<64x4xf32>
    tpu.vector_store %arg6[%c0_11, %c0_12], %12 {strides = array<i32>} : memref<64x4xf32, #tpu.memory_space<vmem>>, vector<64x4xf32>,
    return
  }
  func.func @transform_0(%arg0: i32) -> (i32, i32) {
    %c0_i32 = arith.constant 0 : i32
    %c0_i32_0 = arith.constant 0 : i32
    return %arg0, %c0_i32 : i32, i32
  }
  func.func @transform_1(%arg0: i32) -> (i32, i32) {
    %c0_i32 = arith.constant 0 : i32
    %c0_i32_0 = arith.constant 0 : i32
    %c0_i32_1 = arith.constant 0 : i32
    return %c0_i32, %c0_i32_0 : i32, i32
  }
  func.func @transform_2(%arg0: i32) -> (i32, i32) {
    %c0_i32 = arith.constant 0 : i32
    %c0_i32_0 = arith.constant 0 : i32
    %c0_i32_1 = arith.constant 0 : i32
    return %c0_i32, %c0_i32_0 : i32, i32
  }
  func.func @transform_3(%arg0: i32) -> (i32, i32) {
    %c0_i32 = arith.constant 0 : i32
    %c0_i32_0 = arith.constant 0 : i32
    %c0_i32_1 = arith.constant 0 : i32
    return %c0_i32, %c0_i32_0 : i32, i32
  }
  func.func @transform_4(%arg0: i32) -> (i32, i32) {
    %c0_i32 = arith.constant 0 : i32
    %c0_i32_0 = arith.constant 0 : i32
    %c0_i32_1 = arith.constant 0 : i32
    return %c0_i32, %c0_i32_0 : i32, i32
  }
  func.func @transform_5(%arg0: i32) -> (i32, i32) {
    %c0_i32 = arith.constant 0 : i32
    %c0_i32_0 = arith.constant 0 : i32
    return %arg0, %c0_i32 : i32, i32
  }
}

</mosaic_0001>

<bundles_post_ra>
// kernel: tpu_custom_call.1
= control target key start
LH: loop header
LB: loop body
LE: loop exit
PB: predicated region body
PF: predicated region fallthrough
CT: control target
= control target key end

     0   :  { %s734_s18 = smov 0   ;;  %s806_s0 = inlined_call_operand.vmem [shape: f32[128,16], index: 0, kind: input, shape index: {}]   ;;  %s807_s1 = inlined_call_operand.vmem [shape: f32[16,32], index: 1, kind: input, shape index: {}]   ;;  %s808_s2 = inlined_call_operand.vmem [shape: f32[1,32], index: 2, kind: input, shape index: {}]   ;;  %s809_s3 = inlined_call_operand.vmem [shape: f32[32,4], index: 3, kind: input, shape index: {}]   ;;  %s810_s4 = inlined_call_operand.vmem [shape: f32[1,4], index: 4, kind: input, shape index: {}]   ;;  %s811_s5 = inlined_call_operand.vmem [shape: f32[128,4], index: 5, kind: output, shape index: {}]  }
   0x1 LB: > { %s589_s19 = sadd.s32 4294967295, %s702_s18   ;;  %p593_p0 = scmp.ge.s32.totalorder %s702_s18, 1  ;;  %s702_s18 = sphi %s734_s18, %s15_s18  }
   0x2   : > { %p188_p1 = scmp.lt.s32.totalorder %s702_s18, 3 }
   0x4   : > { %p189_p2 = pnand %p593_p0, %p188_p1 }
   0x5   : > { %v236_v0 = vld [vmem:[%s807_s1] sm:$0xff] (!%p189_p2)  ;;  %v237_v1 = vld [vmem:[%s807_s1 + $0x8] sm:$0xff] (!%p189_p2)  ;;  %s594_s24 = sshll.u32 (!%p189_p2), %s589_s19, 3  ;;  %vm245_vm0 = vcmask (!%p189_p2), 130048   ;;  %v385_v14 = vld [vmem:[%s809_s3 + $0x10] sm:$0xff] (!%p189_p2)  ;;  %vm394_vm1 = vcmask (!%p189_p2), 261120  }
   0x6   : > { %192 = sbr.rel (%p189_p2) target bundleno = 464 (0x1d0), region = 40  ;;  %v383_v2 = vld [vmem:[%s809_s3] sm:$0xff] (!%p189_p2)  ;;  %v676_v3 = vpack.c.bf16 (!%p189_p2), %v237_v1, %v236_v0  ;;  %p217_p3 = scmp.lt.s32.totalorder (!%p189_p2), %s594_s24, 15  ;;  %v384_v4 = vld [vmem:[%s809_s3 + $0x8] sm:$0xff] (!%p189_p2)  ;;  %v386_v15 = vld [vmem:[%s809_s3 + $0x18] sm:$0xff] (!%p189_p2)  ;;  %vm524_vm2 = vcmask (!%p189_p2), 31744  }
   0x7   : > { %v680_v5 = vpack.c.bf16 (!%p189_p2), %v384_v4, %v383_v2  ;;  %v684_v16 = vpack.c.bf16 (!%p189_p2), %v386_v15, %v385_v14  ;;  %v598_v17 = vld [vmem:[%s808_s2] ss:$0 sm:$0xff] (!%p189_p2) }
   0x8   : > { %677 = vmatprep.subr.bf16.mxu0 (!%p189_p2), %v676_v3  ;;  %v607_v42 = vld [vmem:[%s810_s4] ss:$0 sm:$0xff] (!%p189_p2) }
   0x9   : > { %679 = vmatpush3.bf16.msra.mxu0 (!%p189_p2), %v676_v3  ;;  %681 = vmatprep.subr.bf16.mxu1 (!%p189_p2), %v680_v5 }
   0xa   : > { %683 = vmatpush3.bf16.msra.mxu1 (!%p189_p2), %v680_v5 }
   0xb   : > { %685 = vmatprep.subr.bf16.mxu1 (!%p189_p2), %v684_v16 }
   0xd   : > { %s813_s24 = smov (!%p217_p3, %s594_s24), 15 }
   0xe   : > { %s595_s29 = sshll.u32 %s813_s24, 3  ;;  %687 = vmatpush3.bf16.msra.mxu1 %v684_v16 }
   0xf   : > { %s220_s7 = scalar_lea.vmem %s806_s0, %s595_s29  ;;  %s226_s19 = scalar_lea.vmem %s811_s5, %s595_s29 }
  0x10   : > { %v228_v6 = vld [vmem:[%s220_s7] sm:$0xff]  ;;  %v229_v7 = vld [vmem:[%s220_s7 + $0x8] sm:$0xff]  ;;  %v230_v8 = vld [vmem:[%s220_s7 + $0x10] sm:$0xff] }
  0x11   : > { %644 = vmatprep.mubr.msk.f32.mxu0 %vm245_vm0, %v228_v6  ;;  %v231_v9 = vld [vmem:[%s220_s7 + $0x18] sm:$0xff]  ;;  %v232_v10 = vld [vmem:[%s220_s7 + $0x20] sm:$0xff]  ;;  %v233_v11 = vld [vmem:[%s220_s7 + $0x28] sm:$0xff] }
  0x12   : > { %645 = vmatmul.mubr.msk.f32.vlgmr.msra.gmra.mrb[0].mxu0 %vm245_vm0, %v229_v7  ;;  %v234_v12 = vld [vmem:[%s220_s7 + $0x30] sm:$0xff]  ;;  %v235_v13 = vld [vmem:[%s220_s7 + $0x38] sm:$0xff] }
  0x13   : > { %647 = vmatprep.mubr.msk.f32.mxu0 %vm245_vm0, %v230_v8 }
  0x16   : > { %648 = vmatmul.mubr.msk.f32.gmra.mrb[2].mxu0 %vm245_vm0, %v231_v9 }
  0x17   : > { %650 = vmatprep.mubr.msk.f32.mxu0 %vm245_vm0, %v232_v10 }
  0x1a   : > { %651 = vmatmul.mubr.msk.f32.gmra.mrb[4].mxu0 %vm245_vm0, %v233_v11 }
  0x1b   : > { %653 = vmatprep.mubr.msk.f32.mxu0 %vm245_vm0, %v234_v12 }
  0x1e   : > { %654 = vmatmul.mubr.msk.f32.gmra.mrb[6].mxu0 %vm245_vm0, %v235_v13 }
  0xe5   : > { %v646_v18 = vpop.f32.mrb[0].mxu0 }
  0xe6   : > { %v342_v19 = vadd.f32 %v646_v18, %v598_v17  ;;  %v336_v20 = vpop.f32.mrb[1].mxu0 }
  0xe7   : > { %v337_v21 = vadd.f32 %v598_v17, %v336_v20 }
  0xe8   : > { %v376_v24 = vmax.f32 %v342_v19, 0.0 }
  0xe9   : > { %v375_v22 = vmax.f32 %v337_v21, 0.0  ;;  %v649_v23 = vpop.f32.mrb[2].mxu0 }
  0xea   : > { %v352_v25 = vadd.f32 %v649_v23, %v598_v17  ;;  %v346_v26 = vpop.f32.mrb[3].mxu0 }
  0xeb   : > { %v347_v27 = vadd.f32 %v598_v17, %v346_v26  ;;  %664 = vmatprep.mubr.msk.f32.mxu1 %vm394_vm1, %v375_v22 }
  0xec   : > { %665 = vmatmul.mubr.msk.f32.vlgmr.msra.gmra.mrb[0].mxu1 %vm394_vm1, %v376_v24  ;;  %v378_v30 = vmax.f32 %v352_v25, 0.0 }
  0xed   : > { %v377_v28 = vmax.f32 %v347_v27, 0.0  ;;  %v652_v29 = vpop.f32.mrb[4].mxu0 }
  0xee   : > { %v362_v31 = vadd.f32 %v652_v29, %v598_v17  ;;  %v356_v32 = vpop.f32.mrb[5].mxu0 }
  0xef   : > { %v357_v33 = vadd.f32 %v598_v17, %v356_v32  ;;  %667 = vmatprep.mubr.msk.f32.mxu1 %vm394_vm1, %v377_v28 }
  0xf0   : > { %668 = vmatmul.mubr.msk.f32.gmra.mrb[2].mxu1 %vm394_vm1, %v378_v30  ;;  %v380_v36 = vmax.f32 %v362_v31, 0.0 }
  0xf1   : > { %v379_v34 = vmax.f32 %v357_v33, 0.0  ;;  %v655_v35 = vpop.f32.mrb[6].mxu0 }
  0xf2   : > { %v372_v37 = vadd.f32 %v655_v35, %v598_v17  ;;  %v366_v38 = vpop.f32.mrb[7].mxu0 }
  0xf3   : > { %v367_v39 = vadd.f32 %v598_v17, %v366_v38  ;;  %670 = vmatprep.mubr.msk.f32.mxu1 %vm394_vm1, %v379_v34 }
  0xf4   : > { %671 = vmatmul.mubr.msk.f32.gmra.mrb[4].mxu1 %vm394_vm1, %v380_v36  ;;  %v382_v41 = vmax.f32 %v372_v37, 0.0 }
  0xf5   : > { %v381_v40 = vmax.f32 %v367_v39, 0.0 }
  0xf7   : > { %673 = vmatprep.mubr.msk.f32.mxu1 %vm394_vm1, %v381_v40 }
  0xf8   : > { %674 = vmatmul.mubr.msk.f32.gmra.mrb[6].mxu1 %vm394_vm1, %v382_v41 }
 0x1bf   : > { %v666_v43 = vpop.f32.mrb[0].mxu1 }
 0x1c0   : > { %v491_v44 = vadd.f32 %v666_v43, %v607_v42  ;;  %v485_v45 = vpop.f32.mrb[1].mxu1 }
 0x1c1   : > { %v486_v46 = vadd.f32 %v607_v42, %v485_v45 }
 0x1c2   : > { %526 = vst.msk [vmem:[%s226_s19 + $0x8] sm:$0xff] %vm524_vm2, %v491_v44 }
 0x1c3   : > { %525 = vst.msk [vmem:[%s226_s19] sm:$0xff] %vm524_vm2, %v486_v46  ;;  %v669_v47 = vpop.f32.mrb[2].mxu1 }
 0x1c4   : > { %v501_v48 = vadd.f32 %v669_v47, %v607_v42  ;;  %v495_v49 = vpop.f32.mrb[3].mxu1 }
 0x1c5   : > { %v496_v50 = vadd.f32 %v607_v42, %v495_v49 }
 0x1c6   : > { %528 = vst.msk [vmem:[%s226_s19 + $0x18] sm:$0xff] %vm524_vm2, %v501_v48 }
 0x1c7   : > { %527 = vst.msk [vmem:[%s226_s19 + $0x10] sm:$0xff] %vm524_vm2, %v496_v50  ;;  %v672_v51 = vpop.f32.mrb[4].mxu1 }
 0x1c8   : > { %v511_v52 = vadd.f32 %v672_v51, %v607_v42  ;;  %v505_v53 = vpop.f32.mrb[5].mxu1 }
 0x1c9   : > { %v506_v54 = vadd.f32 %v607_v42, %v505_v53 }
 0x1ca   : > { %530 = vst.msk [vmem:[%s226_s19 + $0x28] sm:$0xff] %vm524_vm2, %v511_v52 }
 0x1cb   : > { %529 = vst.msk [vmem:[%s226_s19 + $0x20] sm:$0xff] %vm524_vm2, %v506_v54  ;;  %v675_v55 = vpop.f32.mrb[6].mxu1 }
 0x1cc   : > { %v521_v56 = vadd.f32 %v675_v55, %v607_v42  ;;  %v515_v57 = vpop.f32.mrb[7].mxu1 }
 0x1cd   : > { %v516_v58 = vadd.f32 %v607_v42, %v515_v57 }
 0x1ce   : > { %532 = vst.msk [vmem:[%s226_s19 + $0x38] sm:$0xff] %vm524_vm2, %v521_v56 }
 0x1cf   : > { %531 = vst.msk [vmem:[%s226_s19 + $0x30] sm:$0xff] %vm524_vm2, %v516_v58 }
 0x1d0 PF: > { %s15_s18 = sadd.s32 1, %s702_s18  }
 0x1d1   : > { %p12_p4 = scmp.ge.s32.totalorder %s15_s18, 4  }
 0x1d3   :  { %14 = sbr.rel (!%p12_p4) target bundleno = 1 (0x1), region = 70 }

</bundles_post_ra>
